<compile_context>
chip_gen: v5e
topology: v5e:2x2
jax: 0.10.0
libtpu: 0.0.40
codegen_flags: <defaults>
</compile_context>

<pallas_src>
import functools

import jax
import jax.numpy as jnp
from jax.experimental import pallas as pl
from jax.experimental.pallas import tpu as pltpu

_LN_EPS = 1e-5


# ----------------------------------------------------------------------------
# Fused kernel: whole MSIG trunk for one row tile, activation never leaves VMEM.
# ----------------------------------------------------------------------------
def _msig_fused_kernel(x_ref,                       # (TR, Din)
                       emb_w_ref, emb_b_ref,        # (Din, H), (1, H)
                       w1_ref, b1_ref,              # (H, H), (1, H)
                       w2_ref, b2_ref,              # (H, H), (1, H)
                       ng_ref, nb_ref,              # self.norm  gamma/beta (1, H)
                       gg_ref, gb_ref,              # globalattention LN gamma/beta
                       pw_ref, pb_ref,              # projection (1, H), (1, 1)
                       o_ref):                      # (TR, 1)

    # ---- hoist every parameter read once (helpers below are traced twice) ----
    emb_w = emb_w_ref[...]                          # (Din, H) f32 (VPU path)
    emb_b = emb_b_ref[...]                          # (1, H)
    w1 = w1_ref[...].astype(jnp.bfloat16)           # MXU operands in bf16
    w2 = w2_ref[...].astype(jnp.bfloat16)
    b1 = b1_ref[...]
    b2 = b2_ref[...]
    ng = ng_ref[...]
    nb = nb_ref[...]
    gg = gg_ref[...]
    gb = gb_ref[...]
    pw = pw_ref[...]                                # (1, H)
    pb = pb_ref[...]                                # (1, 1)

    def _layernorm(t, g, b):
        # Two-pass (centered) variance -- matches PyTorch LayerNorm numerics.
        mean = jnp.mean(t, axis=-1, keepdims=True)
        c = t - mean
        var = jnp.mean(c * c, axis=-1, keepdims=True)
        return c * jax.lax.rsqrt(var + _LN_EPS) * g + b

    def _ffn_relu_ln(v):
        # norm(ReLU(drop(fnn(v)))); fnn = Linear -> ReLU -> Dropout -> Linear,
        # dropout layers are identity in eval mode.  bf16 MXU, f32 accumulate.
        t = jnp.dot(v.astype(jnp.bfloat16), w1,
                    preferred_element_type=jnp.float32) + b1
        t = jnp.maximum(t, 0.0)                                   # fnn inner ReLU
        t = jnp.dot(t.astype(jnp.bfloat16), w2,
                    preferred_element_type=jnp.float32) + b2
        t = jnp.maximum(t, 0.0)                                   # self.act / self.Rule
        return _layernorm(t, ng, nb)                              # self.norm

    x = x_ref[...]                                                # (TR, Din) f32

    # --- embedding: Din rank-1 VPU updates (Din tiny -> don't waste MXU depth)
    # TODO(synk): DataEmbedding_enc source not provided; a linear value
    # embedding (c_in -> hidden) stands in for it.
    din = x.shape[1]
    emb_x = x[:, 0:1] * emb_w[0:1, :]
    for k in range(1, din):
        emb_x = emb_x + x[:, k:k + 1] * emb_w[k:k + 1, :]
    emb_x = emb_x + emb_b                                         # (TR, H)

    # --- multiscale feature capture ----------------------------------------
    # TODO(synk): Feature_capture / decoder_cat / att_model / GlobalAttention
    # sources not provided; treated as identity pass-throughs, so only the ops
    # defined in MSIG itself are computed.
    inter_local = _ffn_relu_ln(emb_x)          # inter_local = norm(act(drop(fnn(.))))
    dec_h = inter_local                        # ATT(enc_local) pass-through

    # globalattention = Sequential(GlobalAttention, Dropout, LayerNorm, Tanh)
    dec_pred = jnp.tanh(_layernorm(dec_h, gg, gb))

    # dec_pred = norm(Rule(fnn(dec_pred)))  (same shared fnn / norm modules)
    dec_pred = _ffn_relu_ln(dec_pred)

    # --- fused H -> 1 projection: one lane reduction per row tile ----------
    y = jnp.sum(dec_pred * pw, axis=-1, keepdims=True) + pb       # (TR, 1)
    o_ref[...] = y.astype(o_ref.dtype)


# ----------------------------------------------------------------------------
# Parameters
# ----------------------------------------------------------------------------
def init_msig_params(key, dim, hidden_dim):
    ks = jax.random.split(key, 6)
    s = 0.02
    return {
        # value embedding (stands in for DataEmbedding_enc)
        "emb_w": s * jax.random.normal(ks[0], (dim, hidden_dim), jnp.float32),
        "emb_b": jnp.zeros((1, hidden_dim), jnp.float32),
        # FeedForwardNetwork(hidden, hidden): Linear -> ReLU -> Linear
        "fnn_w1": s * jax.random.normal(ks[1], (hidden_dim, hidden_dim), jnp.float32),
        "fnn_b1": jnp.zeros((1, hidden_dim), jnp.float32),
        "fnn_w2": s * jax.random.normal(ks[2], (hidden_dim, hidden_dim), jnp.float32),
        "fnn_b2": jnp.zeros((1, hidden_dim), jnp.float32),
        # self.norm = LayerNorm(hidden_dim)
        "norm_g": jnp.ones((1, hidden_dim), jnp.float32),
        "norm_b": jnp.zeros((1, hidden_dim), jnp.float32),
        # LayerNorm inside the `globalattention` Sequential
        "ga_ln_g": jnp.ones((1, hidden_dim), jnp.float32),
        "ga_ln_b": jnp.zeros((1, hidden_dim), jnp.float32),
        # self.projection = Linear(hidden_dim, 1)
        "proj_w": s * jax.random.normal(ks[3], (hidden_dim, 1), jnp.float32),
        "proj_b": jnp.zeros((1, 1), jnp.float32),
    }


# ----------------------------------------------------------------------------
# Forward: row-tiled fused Pallas kernel; only (R, 1) leaves the kernel.
# ----------------------------------------------------------------------------
@functools.partial(jax.jit, static_argnames=("output_dim", "tile_rows"))
def msig_forward(x, params, output_dim, tile_rows=256):
    B, L, Din = x.shape
    H = params["emb_w"].shape[1]
    R = B * L

    # Collapse (B, L) into one row axis; everything in the fused kernel is
    # per-row, so a row-tiled (TR, .) lane/sublane-dense layout is natural.
    # NOTE: at realistic sizes H should itself be a lane-dense multiple of
    # 128/256; H=32 here is the toy size implied by the module.
    x2d = x.reshape(R, Din)

    # Row tile: multiple of 8 (f32 sublane), capped so double-buffered tiles +
    # resident weights stay well inside v7x's 64 MiB VMEM.  Pad R up to a
    # multiple of TR (extra rows compute garbage that is sliced off below).
    TR = min(tile_rows, ((R + 7) // 8) * 8)
    n_tiles = pl.cdiv(R, TR)
    R_pad = n_tiles * TR
    if R_pad != R:
        x2d = jnp.pad(x2d, ((0, R_pad - R), (0, 0)))

    def resident(p):
        # Weight/bias blocks: full array, constant block index -> stay in VMEM
        # across grid steps, never re-DMA'd.
        return pl.BlockSpec(p.shape, lambda i: (0, 0))

    proj_w_t = params["proj_w"].T                                  # (1, H)

    out = pl.pallas_call(
        _msig_fused_kernel,
        out_shape=jax.ShapeDtypeStruct((R_pad, 1), jnp.float32),
        grid=(n_tiles,),
        in_specs=[
            pl.BlockSpec((TR, Din), lambda i: (i, 0)),             # x rows
            resident(params["emb_w"]), resident(params["emb_b"]),
            resident(params["fnn_w1"]), resident(params["fnn_b1"]),
            resident(params["fnn_w2"]), resident(params["fnn_b2"]),
            resident(params["norm_g"]), resident(params["norm_b"]),
            resident(params["ga_ln_g"]), resident(params["ga_ln_b"]),
            resident(proj_w_t), resident(params["proj_b"]),
        ],
        out_specs=pl.BlockSpec((TR, 1), lambda i: (i, 0)),
        # Rows are independent -> shard tiles across v7x's 2 TensorCores
        # (no-op on v5e/v6e).  If TR/H are raised beyond defaults, also set
        # vmem_limit_bytes explicitly.
        compiler_params=pltpu.CompilerParams(
            dimension_semantics=("parallel",)),
    )(x2d,
      params["emb_w"], params["emb_b"],
      params["fnn_w1"], params["fnn_b1"],
      params["fnn_w2"], params["fnn_b2"],
      params["norm_g"], params["norm_b"],
      params["ga_ln_g"], params["ga_ln_b"],
      proj_w_t, params["proj_b"])

    # dec_pred = projection(dec_pred[:, :output, :])  -- projection already
    # fused in-kernel; only the row slice remains (matches the PyTorch slice).
    return out[:R].reshape(B, L, 1)[:, :output_dim, :]             # (B, output, 1)


# ----------------------------------------------------------------------------
if __name__ == "__main__":
    B, L, DIM, HIDDEN, OUTPUT = 2, 8, 4, 32, 4

    key = jax.random.PRNGKey(0)
    k_x, k_p = jax.random.split(key)
    x = jax.random.normal(k_x, (B, L, DIM), jnp.float32)   # (batch, seq, features)
    params = init_msig_params(k_p, DIM, HIDDEN)

    out = msig_forward(x, params, OUTPUT)
    jax.block_until_ready(out)
    assert out.shape == (B, OUTPUT, 1), out.shape
    print("KERNEL_OK")
</pallas_src>

<mosaic_0001>
module attributes {stable_mosaic.version = 11 : i64} {
  func.func @_msig_fused_kernel(%arg0: i32, %arg1: memref<16x4xf32, #tpu.memory_space<vmem>>, %arg2: memref<4x32xf32, #tpu.memory_space<vmem>>, %arg3: memref<1x32xf32, #tpu.memory_space<vmem>>, %arg4: memref<32x32xf32, #tpu.memory_space<vmem>>, %arg5: memref<1x32xf32, #tpu.memory_space<vmem>>, %arg6: memref<32x32xf32, #tpu.memory_space<vmem>>, %arg7: memref<1x32xf32, #tpu.memory_space<vmem>>, %arg8: memref<1x32xf32, #tpu.memory_space<vmem>>, %arg9: memref<1x32xf32, #tpu.memory_space<vmem>>, %arg10: memref<1x32xf32, #tpu.memory_space<vmem>>, %arg11: memref<1x32xf32, #tpu.memory_space<vmem>>, %arg12: memref<1x32xf32, #tpu.memory_space<vmem>>, %arg13: memref<1x1xf32, #tpu.memory_space<vmem>>, %arg14: memref<16x1xf32, #tpu.memory_space<vmem>>) attributes {dimension_semantics = [#tpu.dimension_semantics<parallel>], iteration_bounds = array<i64: 1>, scalar_prefetch = 0 : i64, scratch_operands = 0 : i64, tpu.core_type = #tpu.core_type<tc>, window_params = [{transform_indices = @transform_0, window_bounds = array<i64: 16, 4>}, {pipeline_mode = #tpu.pipeline_mode<synchronous>, transform_indices = @transform_1, window_bounds = array<i64: 4, 32>}, {pipeline_mode = #tpu.pipeline_mode<synchronous>, transform_indices = @transform_2, window_bounds = array<i64: 1, 32>}, {pipeline_mode = #tpu.pipeline_mode<synchronous>, transform_indices = @transform_3, window_bounds = array<i64: 32, 32>}, {pipeline_mode = #tpu.pipeline_mode<synchronous>, transform_indices = @transform_4, window_bounds = array<i64: 1, 32>}, {pipeline_mode = #tpu.pipeline_mode<synchronous>, transform_indices = @transform_5, window_bounds = array<i64: 32, 32>}, {pipeline_mode = #tpu.pipeline_mode<synchronous>, transform_indices = @transform_6, window_bounds = array<i64: 1, 32>}, {pipeline_mode = #tpu.pipeline_mode<synchronous>, transform_indices = @transform_7, window_bounds = array<i64: 1, 32>}, {pipeline_mode = #tpu.pipeline_mode<synchronous>, transform_indices = @transform_8, window_bounds = array<i64: 1, 32>}, {pipeline_mode = #tpu.pipeline_mode<synchronous>, transform_indices = @transform_9, window_bounds = array<i64: 1, 32>}, {pipeline_mode = #tpu.pipeline_mode<synchronous>, transform_indices = @transform_10, window_bounds = array<i64: 1, 32>}, {pipeline_mode = #tpu.pipeline_mode<synchronous>, transform_indices = @transform_11, window_bounds = array<i64: 1, 32>}, {pipeline_mode = #tpu.pipeline_mode<synchronous>, transform_indices = @transform_12, window_bounds = array<i64: 1, 1>}, {transform_indices = @transform_13, window_bounds = array<i64: 16, 1>}]} {
    %c0 = arith.constant 0 : index
    %c0_0 = arith.constant 0 : index
    %0 = vector.load %arg2[%c0, %c0_0] : memref<4x32xf32, #tpu.memory_space<vmem>>, vector<4x32xf32>
    %c0_1 = arith.constant 0 : index
    %c0_2 = arith.constant 0 : index
    %1 = vector.load %arg3[%c0_1, %c0_2] : memref<1x32xf32, #tpu.memory_space<vmem>>, vector<1x32xf32>
    %c0_3 = arith.constant 0 : index
    %c0_4 = arith.constant 0 : index
    %2 = vector.load %arg4[%c0_3, %c0_4] : memref<32x32xf32, #tpu.memory_space<vmem>>, vector<32x32xf32>
    %3 = arith.truncf %2 : vector<32x32xf32> to vector<32x32xbf16>
    %c0_5 = arith.constant 0 : index
    %c0_6 = arith.constant 0 : index
    %4 = vector.load %arg6[%c0_5, %c0_6] : memref<32x32xf32, #tpu.memory_space<vmem>>, vector<32x32xf32>
    %5 = arith.truncf %4 : vector<32x32xf32> to vector<32x32xbf16>
    %c0_7 = arith.constant 0 : index
    %c0_8 = arith.constant 0 : index
    %6 = vector.load %arg5[%c0_7, %c0_8] : memref<1x32xf32, #tpu.memory_space<vmem>>, vector<1x32xf32>
    %c0_9 = arith.constant 0 : index
    %c0_10 = arith.constant 0 : index
    %7 = vector.load %arg7[%c0_9, %c0_10] : memref<1x32xf32, #tpu.memory_space<vmem>>, vector<1x32xf32>
    %c0_11 = arith.constant 0 : index
    %c0_12 = arith.constant 0 : index
    %8 = vector.load %arg8[%c0_11, %c0_12] : memref<1x32xf32, #tpu.memory_space<vmem>>, vector<1x32xf32>
    %c0_13 = arith.constant 0 : index
    %c0_14 = arith.constant 0 : index
    %9 = vector.load %arg9[%c0_13, %c0_14] : memref<1x32xf32, #tpu.memory_space<vmem>>, vector<1x32xf32>
    %c0_15 = arith.constant 0 : index
    %c0_16 = arith.constant 0 : index
    %10 = vector.load %arg10[%c0_15, %c0_16] : memref<1x32xf32, #tpu.memory_space<vmem>>, vector<1x32xf32>
    %c0_17 = arith.constant 0 : index
    %c0_18 = arith.constant 0 : index
    %11 = vector.load %arg11[%c0_17, %c0_18] : memref<1x32xf32, #tpu.memory_space<vmem>>, vector<1x32xf32>
    %c0_19 = arith.constant 0 : index
    %c0_20 = arith.constant 0 : index
    %12 = vector.load %arg12[%c0_19, %c0_20] : memref<1x32xf32, #tpu.memory_space<vmem>>, vector<1x32xf32>
    %c0_21 = arith.constant 0 : index
    %c0_22 = arith.constant 0 : index
    %13 = vector.load %arg13[%c0_21, %c0_22] : memref<1x1xf32, #tpu.memory_space<vmem>>, vector<1x1xf32>
    %c0_23 = arith.constant 0 : index
    %c0_24 = arith.constant 0 : index
    %14 = vector.load %arg1[%c0_23, %c0_24] : memref<16x4xf32, #tpu.memory_space<vmem>>, vector<16x4xf32>
    %15 = vector.extract_strided_slice %14 {offsets = [0, 0], sizes = [16, 1], strides = [1, 1]} : vector<16x4xf32> to vector<16x1xf32>
    %16 = vector.extract_strided_slice %0 {offsets = [0, 0], sizes = [1, 32], strides = [1, 1]} : vector<4x32xf32> to vector<1x32xf32>
    %17 = vector.broadcast %15 : vector<16x1xf32> to vector<16x32xf32>
    %18 = vector.broadcast %16 : vector<1x32xf32> to vector<16x32xf32>
    %19 = arith.mulf %17, %18 : vector<16x32xf32>
    %20 = vector.extract_strided_slice %14 {offsets = [0, 1], sizes = [16, 1], strides = [1, 1]} : vector<16x4xf32> to vector<16x1xf32>
    %21 = vector.extract_strided_slice %0 {offsets = [1, 0], sizes = [1, 32], strides = [1, 1]} : vector<4x32xf32> to vector<1x32xf32>
    %22 = vector.broadcast %20 : vector<16x1xf32> to vector<16x32xf32>
    %23 = vector.broadcast %21 : vector<1x32xf32> to vector<16x32xf32>
    %24 = arith.mulf %22, %23 : vector<16x32xf32>
    %25 = arith.addf %19, %24 : vector<16x32xf32>
    %26 = vector.extract_strided_slice %14 {offsets = [0, 2], sizes = [16, 1], strides = [1, 1]} : vector<16x4xf32> to vector<16x1xf32>
    %27 = vector.extract_strided_slice %0 {offsets = [2, 0], sizes = [1, 32], strides = [1, 1]} : vector<4x32xf32> to vector<1x32xf32>
    %28 = vector.broadcast %26 : vector<16x1xf32> to vector<16x32xf32>
    %29 = vector.broadcast %27 : vector<1x32xf32> to vector<16x32xf32>
    %30 = arith.mulf %28, %29 : vector<16x32xf32>
    %31 = arith.addf %25, %30 : vector<16x32xf32>
    %32 = vector.extract_strided_slice %14 {offsets = [0, 3], sizes = [16, 1], strides = [1, 1]} : vector<16x4xf32> to vector<16x1xf32>
    %33 = vector.extract_strided_slice %0 {offsets = [3, 0], sizes = [1, 32], strides = [1, 1]} : vector<4x32xf32> to vector<1x32xf32>
    %34 = vector.broadcast %32 : vector<16x1xf32> to vector<16x32xf32>
    %35 = vector.broadcast %33 : vector<1x32xf32> to vector<16x32xf32>
    %36 = arith.mulf %34, %35 : vector<16x32xf32>
    %37 = arith.addf %31, %36 : vector<16x32xf32>
    %38 = vector.broadcast %1 : vector<1x32xf32> to vector<16x32xf32>
    %39 = arith.addf %37, %38 : vector<16x32xf32>
    %40 = arith.truncf %39 : vector<16x32xf32> to vector<16x32xbf16>
    %cst = arith.constant dense<0.000000e+00> : vector<16x32xf32>
    %41 = tpu.matmul %40, %3, %cst {dimension_numbers = #tpu.dot_dimension_numbers<[1], [0], [0], [1], [0, 0, 1, 1], [], []>} : vector<16x32xbf16>, vector<32x32xbf16>, vector<16x32xf32> -> vector<16x32xf32>
    %42 = vector.broadcast %6 : vector<1x32xf32> to vector<16x32xf32>
    %43 = arith.addf %41, %42 : vector<16x32xf32>
    %cst_25 = arith.constant 0.000000e+00 : f32
    %44 = vector.broadcast %cst_25 : f32 to vector<16x32xf32>
    %45 = arith.maximumf %43, %44 : vector<16x32xf32>
    %46 = arith.truncf %45 : vector<16x32xf32> to vector<16x32xbf16>
    %cst_26 = arith.constant dense<0.000000e+00> : vector<16x32xf32>
    %47 = tpu.matmul %46, %5, %cst_26 {dimension_numbers = #tpu.dot_dimension_numbers<[1], [0], [0], [1], [0, 0, 1, 1], [], []>} : vector<16x32xbf16>, vector<32x32xbf16>, vector<16x32xf32> -> vector<16x32xf32>
    %48 = vector.broadcast %7 : vector<1x32xf32> to vector<16x32xf32>
    %49 = arith.addf %47, %48 : vector<16x32xf32>
    %cst_27 = arith.constant 0.000000e+00 : f32
    %50 = vector.broadcast %cst_27 : f32 to vector<16x32xf32>
    %51 = arith.maximumf %49, %50 : vector<16x32xf32>
    %cst_28 = arith.constant dense<0.000000e+00> : vector<16xf32>
    %52 = vector.multi_reduction <add>, %51, %cst_28 [1] : vector<16x32xf32> to vector<16xf32>
    %53 = vector.shape_cast %52 : vector<16xf32> to vector<16x1xf32>
    %cst_29 = arith.constant 3.200000e+01 : f32
    %54 = vector.broadcast %cst_29 : f32 to vector<16x1xf32>
    %55 = arith.divf %53, %54 : vector<16x1xf32>
    %56 = vector.broadcast %55 : vector<16x1xf32> to vector<16x32xf32>
    %57 = arith.subf %51, %56 : vector<16x32xf32>
    %58 = arith.mulf %57, %57 : vector<16x32xf32>
    %cst_30 = arith.constant dense<0.000000e+00> : vector<16xf32>
    %59 = vector.multi_reduction <add>, %58, %cst_30 [1] : vector<16x32xf32> to vector<16xf32>
    %60 = vector.shape_cast %59 : vector<16xf32> to vector<16x1xf32>
    %cst_31 = arith.constant 3.200000e+01 : f32
    %61 = vector.broadcast %cst_31 : f32 to vector<16x1xf32>
    %62 = arith.divf %60, %61 : vector<16x1xf32>
    %cst_32 = arith.constant 9.99999974E-6 : f32
    %63 = vector.broadcast %cst_32 : f32 to vector<16x1xf32>
    %64 = arith.addf %62, %63 : vector<16x1xf32>
    %65 = math.rsqrt %64 : vector<16x1xf32>
    %66 = vector.broadcast %65 : vector<16x1xf32> to vector<16x32xf32>
    %67 = arith.mulf %57, %66 : vector<16x32xf32>
    %68 = vector.broadcast %8 : vector<1x32xf32> to vector<16x32xf32>
    %69 = arith.mulf %67, %68 : vector<16x32xf32>
    %70 = vector.broadcast %9 : vector<1x32xf32> to vector<16x32xf32>
    %71 = arith.addf %69, %70 : vector<16x32xf32>
    %cst_33 = arith.constant dense<0.000000e+00> : vector<16xf32>
    %72 = vector.multi_reduction <add>, %71, %cst_33 [1] : vector<16x32xf32> to vector<16xf32>
    %73 = vector.shape_cast %72 : vector<16xf32> to vector<16x1xf32>
    %cst_34 = arith.constant 3.200000e+01 : f32
    %74 = vector.broadcast %cst_34 : f32 to vector<16x1xf32>
    %75 = arith.divf %73, %74 : vector<16x1xf32>
    %76 = vector.broadcast %75 : vector<16x1xf32> to vector<16x32xf32>
    %77 = arith.subf %71, %76 : vector<16x32xf32>
    %78 = arith.mulf %77, %77 : vector<16x32xf32>
    %cst_35 = arith.constant dense<0.000000e+00> : vector<16xf32>
    %79 = vector.multi_reduction <add>, %78, %cst_35 [1] : vector<16x32xf32> to vector<16xf32>
    %80 = vector.shape_cast %79 : vector<16xf32> to vector<16x1xf32>
    %cst_36 = arith.constant 3.200000e+01 : f32
    %81 = vector.broadcast %cst_36 : f32 to vector<16x1xf32>
    %82 = arith.divf %80, %81 : vector<16x1xf32>
    %cst_37 = arith.constant 9.99999974E-6 : f32
    %83 = vector.broadcast %cst_37 : f32 to vector<16x1xf32>
    %84 = arith.addf %82, %83 : vector<16x1xf32>
    %85 = math.rsqrt %84 : vector<16x1xf32>
    %86 = vector.broadcast %85 : vector<16x1xf32> to vector<16x32xf32>
    %87 = arith.mulf %77, %86 : vector<16x32xf32>
    %88 = vector.broadcast %10 : vector<1x32xf32> to vector<16x32xf32>
    %89 = arith.mulf %87, %88 : vector<16x32xf32>
    %90 = vector.broadcast %11 : vector<1x32xf32> to vector<16x32xf32>
    %91 = arith.addf %89, %90 : vector<16x32xf32>
    %92 = math.tanh %91 : vector<16x32xf32>
    %93 = arith.truncf %92 : vector<16x32xf32> to vector<16x32xbf16>
    %cst_38 = arith.constant dense<0.000000e+00> : vector<16x32xf32>
    %94 = tpu.matmul %93, %3, %cst_38 {dimension_numbers = #tpu.dot_dimension_numbers<[1], [0], [0], [1], [0, 0, 1, 1], [], []>} : vector<16x32xbf16>, vector<32x32xbf16>, vector<16x32xf32> -> vector<16x32xf32>
    %95 = vector.broadcast %6 : vector<1x32xf32> to vector<16x32xf32>
    %96 = arith.addf %94, %95 : vector<16x32xf32>
    %cst_39 = arith.constant 0.000000e+00 : f32
    %97 = vector.broadcast %cst_39 : f32 to vector<16x32xf32>
    %98 = arith.maximumf %96, %97 : vector<16x32xf32>
    %99 = arith.truncf %98 : vector<16x32xf32> to vector<16x32xbf16>
    %cst_40 = arith.constant dense<0.000000e+00> : vector<16x32xf32>
    %100 = tpu.matmul %99, %5, %cst_40 {dimension_numbers = #tpu.dot_dimension_numbers<[1], [0], [0], [1], [0, 0, 1, 1], [], []>} : vector<16x32xbf16>, vector<32x32xbf16>, vector<16x32xf32> -> vector<16x32xf32>
    %101 = vector.broadcast %7 : vector<1x32xf32> to vector<16x32xf32>
    %102 = arith.addf %100, %101 : vector<16x32xf32>
    %cst_41 = arith.constant 0.000000e+00 : f32
    %103 = vector.broadcast %cst_41 : f32 to vector<16x32xf32>
    %104 = arith.maximumf %102, %103 : vector<16x32xf32>
    %cst_42 = arith.constant dense<0.000000e+00> : vector<16xf32>
    %105 = vector.multi_reduction <add>, %104, %cst_42 [1] : vector<16x32xf32> to vector<16xf32>
    %106 = vector.shape_cast %105 : vector<16xf32> to vector<16x1xf32>
    %cst_43 = arith.constant 3.200000e+01 : f32
    %107 = vector.broadcast %cst_43 : f32 to vector<16x1xf32>
    %108 = arith.divf %106, %107 : vector<16x1xf32>
    %109 = vector.broadcast %108 : vector<16x1xf32> to vector<16x32xf32>
    %110 = arith.subf %104, %109 : vector<16x32xf32>
    %111 = arith.mulf %110, %110 : vector<16x32xf32>
    %cst_44 = arith.constant dense<0.000000e+00> : vector<16xf32>
    %112 = vector.multi_reduction <add>, %111, %cst_44 [1] : vector<16x32xf32> to vector<16xf32>
    %113 = vector.shape_cast %112 : vector<16xf32> to vector<16x1xf32>
    %cst_45 = arith.constant 3.200000e+01 : f32
    %114 = vector.broadcast %cst_45 : f32 to vector<16x1xf32>
    %115 = arith.divf %113, %114 : vector<16x1xf32>
    %cst_46 = arith.constant 9.99999974E-6 : f32
    %116 = vector.broadcast %cst_46 : f32 to vector<16x1xf32>
    %117 = arith.addf %115, %116 : vector<16x1xf32>
    %118 = math.rsqrt %117 : vector<16x1xf32>
    %119 = vector.broadcast %118 : vector<16x1xf32> to vector<16x32xf32>
    %120 = arith.mulf %110, %119 : vector<16x32xf32>
    %121 = vector.broadcast %8 : vector<1x32xf32> to vector<16x32xf32>
    %122 = arith.mulf %120, %121 : vector<16x32xf32>
    %123 = vector.broadcast %9 : vector<1x32xf32> to vector<16x32xf32>
    %124 = arith.addf %122, %123 : vector<16x32xf32>
    %125 = vector.broadcast %12 : vector<1x32xf32> to vector<16x32xf32>
    %126 = arith.mulf %124, %125 : vector<16x32xf32>
    %cst_47 = arith.constant dense<0.000000e+00> : vector<16xf32>
    %127 = vector.multi_reduction <add>, %126, %cst_47 [1] : vector<16x32xf32> to vector<16xf32>
    %128 = vector.shape_cast %127 : vector<16xf32> to vector<16x1xf32>
    %129 = vector.broadcast %13 : vector<1x1xf32> to vector<16x1xf32>
    %130 = arith.addf %128, %129 : vector<16x1xf32>
    %c0_48 = arith.constant 0 : index
    %c0_49 = arith.constant 0 : index
    %131 = vector.load %arg14[%c0_48, %c0_49] : memref<16x1xf32, #tpu.memory_space<vmem>>, vector<16x1xf32>
    tpu.vector_store %arg14[%c0_48, %c0_49], %130 {strides = array<i32>} : memref<16x1xf32, #tpu.memory_space<vmem>>, vector<16x1xf32>,
    return
  }
  func.func @transform_0(%arg0: i32) -> (i32, i32) {
    %c0_i32 = arith.constant 0 : i32
    %c0_i32_0 = arith.constant 0 : i32
    return %arg0, %c0_i32 : i32, i32
  }
  func.func @transform_1(%arg0: i32) -> (i32, i32) {
    %c0_i32 = arith.constant 0 : i32
    %c0_i32_0 = arith.constant 0 : i32
    %c0_i32_1 = arith.constant 0 : i32
    return %c0_i32, %c0_i32_0 : i32, i32
  }
  func.func @transform_2(%arg0: i32) -> (i32, i32) {
    %c0_i32 = arith.constant 0 : i32
    %c0_i32_0 = arith.constant 0 : i32
    %c0_i32_1 = arith.constant 0 : i32
    return %c0_i32, %c0_i32_0 : i32, i32
  }
  func.func @transform_3(%arg0: i32) -> (i32, i32) {
    %c0_i32 = arith.constant 0 : i32
    %c0_i32_0 = arith.constant 0 : i32
    %c0_i32_1 = arith.constant 0 : i32
    return %c0_i32, %c0_i32_0 : i32, i32
  }
  func.func @transform_4(%arg0: i32) -> (i32, i32) {
    %c0_i32 = arith.constant 0 : i32
    %c0_i32_0 = arith.constant 0 : i32
    %c0_i32_1 = arith.constant 0 : i32
    return %c0_i32, %c0_i32_0 : i32, i32
  }
  func.func @transform_5(%arg0: i32) -> (i32, i32) {
    %c0_i32 = arith.constant 0 : i32
    %c0_i32_0 = arith.constant 0 : i32
    %c0_i32_1 = arith.constant 0 : i32
    return %c0_i32, %c0_i32_0 : i32, i32
  }
  func.func @transform_6(%arg0: i32) -> (i32, i32) {
    %c0_i32 = arith.constant 0 : i32
    %c0_i32_0 = arith.constant 0 : i32
    %c0_i32_1 = arith.constant 0 : i32
    return %c0_i32, %c0_i32_0 : i32, i32
  }
  func.func @transform_7(%arg0: i32) -> (i32, i32) {
    %c0_i32 = arith.constant 0 : i32
    %c0_i32_0 = arith.constant 0 : i32
    %c0_i32_1 = arith.constant 0 : i32
    return %c0_i32, %c0_i32_0 : i32, i32
  }
  func.func @transform_8(%arg0: i32) -> (i32, i32) {
    %c0_i32 = arith.constant 0 : i32
    %c0_i32_0 = arith.constant 0 : i32
    %c0_i32_1 = arith.constant 0 : i32
    return %c0_i32, %c0_i32_0 : i32, i32
  }
  func.func @transform_9(%arg0: i32) -> (i32, i32) {
    %c0_i32 = arith.constant 0 : i32
    %c0_i32_0 = arith.constant 0 : i32
    %c0_i32_1 = arith.constant 0 : i32
    return %c0_i32, %c0_i32_0 : i32, i32
  }
  func.func @transform_10(%arg0: i32) -> (i32, i32) {
    %c0_i32 = arith.constant 0 : i32
    %c0_i32_0 = arith.constant 0 : i32
    %c0_i32_1 = arith.constant 0 : i32
    return %c0_i32, %c0_i32_0 : i32, i32
  }
  func.func @transform_11(%arg0: i32) -> (i32, i32) {
    %c0_i32 = arith.constant 0 : i32
    %c0_i32_0 = arith.constant 0 : i32
    %c0_i32_1 = arith.constant 0 : i32
    return %c0_i32, %c0_i32_0 : i32, i32
  }
  func.func @transform_12(%arg0: i32) -> (i32, i32) {
    %c0_i32 = arith.constant 0 : i32
    %c0_i32_0 = arith.constant 0 : i32
    %c0_i32_1 = arith.constant 0 : i32
    return %c0_i32, %c0_i32_0 : i32, i32
  }
  func.func @transform_13(%arg0: i32) -> (i32, i32) {
    %c0_i32 = arith.constant 0 : i32
    %c0_i32_0 = arith.constant 0 : i32
    return %arg0, %c0_i32 : i32, i32
  }
}

</mosaic_0001>

<bundles_post_ra>
// kernel: msig_forward.1
= control target key start
LH: loop header
LB: loop body
LE: loop exit
PB: predicated region body
PF: predicated region fallthrough
CT: control target
= control target key end

     0   :  { %s888_s0 = inlined_call_operand.vmem [shape: f32[16,4], index: 0, kind: input, shape index: {}]   ;;  %s889_s1 = inlined_call_operand.hbm [shape: f32[4,32], index: 1, kind: input, shape index: {}]   ;;  %s890_s2 = inlined_call_operand.hbm [shape: f32[1,32], index: 2, kind: input, shape index: {}]   ;;  %s891_s3 = inlined_call_operand.vmem [shape: f32[32,32], index: 3, kind: input, shape index: {}]   ;;  %s892_s4 = inlined_call_operand.hbm [shape: f32[1,32], index: 4, kind: input, shape index: {}]   ;;  %s893_s5 = inlined_call_operand.hbm [shape: f32[32,32], index: 5, kind: input, shape index: {}]   ;;  %s894_s6 = inlined_call_operand.hbm [shape: f32[1,32], index: 6, kind: input, shape index: {}]   ;;  %s895_s7 = inlined_call_operand.vmem [shape: f32[1,32], index: 7, kind: input, shape index: {}]   ;;  %s896_s8 = inlined_call_operand.vmem [shape: f32[1,32], index: 8, kind: input, shape index: {}]   ;;  %s897_s9 = inlined_call_operand.vmem [shape: f32[1,32], index: 9, kind: input, shape index: {}]   ;;  %s898_s10 = inlined_call_operand.hbm [shape: f32[1,32], index: 10, kind: input, shape index: {}]   ;;  %s899_s11 = inlined_call_operand.vmem [shape: f32[1,32], index: 11, kind: input, shape index: {}]   ;;  %s900_s12 = inlined_call_operand.<no memory space> [shape: f32[1,1], index: 12, kind: input, shape index: {}]   ;;  %s901_s13 = inlined_call_operand.vmem [shape: f32[16,1], index: 13, kind: output, shape index: {}]  }
   0x1   :  { %v18_v0 = vstv %s900_s12 }
   0x2   :  { %19 = vst [vmem:[#allocation2] sm:$0x1] %v18_v0 }
   0x3   :  { %20 = vsyncpa [#allocation4], 0 }
   0x4   :  { %21 = vsyncpa [#allocation6], 0 }
   0x5   :  { %22 = vsyncpa [#allocation9], 0  ;;  %s42_s29 = sshll.u32 %s890_s2, 4  ;;  %s43_s29 = int_to_ptr.hbm [resolvable:$true] %s42_s29 }
   0x6   :  { %23 = vsyncpa [#allocation12], 0  ;;  %s692_s30 = smov [#allocation5]   ;;  %s65_s17 = sshll.u32 %s893_s5, 4  ;;  %s66_s17 = int_to_ptr.hbm [resolvable:$true] %s65_s17 }
   0x7   :  { %s44_s14 = sshll.u32 %s692_s30, 4  ;;  %s693_s12 = smov [#allocation8]   ;;  %s45_s14 = int_to_ptr.vmem [resolvable:$true] %s44_s14 }
   0x8   :  { %47 = dma.hbm_to_vmem [thread:$0]  %s43_s29, 16, %s45_s14, [#allocation6]  }
   0x9   :  { %s67_s18 = sshll.u32 %s693_s12, 4  ;;  %s694_s19 = smov 128   ;;  %s68_s18 = int_to_ptr.vmem [resolvable:$true] %s67_s18 }
   0xa   :  { %s695_s20 = smov 8   ;;  %s31_s2 = sshll.u32 %s889_s1, 4  ;;  %s32_s2 = int_to_ptr.hbm [resolvable:$true] %s31_s2 }
   0xb   :  { %73 = dma.hbm_to_vmem [thread:$0]  %s66_s17, 512, %s68_s18, [#allocation9], %s694_s19, %s694_s19, %s695_s20  }
   0xc   :  { %s696_s23 = smov [#allocation3]   ;;  %s55_s5 = sshll.u32 %s892_s4, 4  ;;  %s56_s5 = int_to_ptr.hbm [resolvable:$true] %s55_s5 }
   0xd   :  { %s33_s24 = sshll.u32 %s696_s23, 4  ;;  %s697_s27 = smov [#allocation7]   ;;  %s34_s24 = int_to_ptr.vmem [resolvable:$true] %s33_s24 }
   0xe   :  { %36 = dma.hbm_to_vmem [thread:$0]  %s32_s2, 64, %s34_s24, [#allocation4]  }
   0xf   :  { %s57_s28 = sshll.u32 %s697_s27, 4  ;;  %s79_s14 = sshll.u32 %s894_s6, 4  ;;  %s58_s28 = int_to_ptr.vmem [resolvable:$true] %s57_s28  ;;  %s80_s14 = int_to_ptr.hbm [resolvable:$true] %s79_s14 }
  0x10   :  { %60 = dma.hbm_to_vmem [thread:$0]  %s56_s5, 16, %s58_s28, [#allocation6]  }
  0x11   :  { %s96_s16 = sshll.u32 %s898_s10, 4  ;;  %s698_s17 = smov [#allocation10]   ;;  %s97_s16 = int_to_ptr.hbm [resolvable:$true] %s96_s16 }
  0x12   :  { %s81_s12 = sshll.u32 %s698_s17, 4  ;;  %s699_s4 = smov [#allocation11]   ;;  %s82_s12 = int_to_ptr.vmem [resolvable:$true] %s81_s12 }
  0x13   :  { %84 = dma.hbm_to_vmem [thread:$0]  %s80_s14, 16, %s82_s12, [#allocation9]  }
  0x14   :  { %s98_s18 = sshll.u32 %s699_s4, 4  ;;  %s99_s18 = int_to_ptr.vmem [resolvable:$true] %s98_s18 }
  0x15   :  { %101 = dma.hbm_to_vmem [thread:$0]  %s97_s16, 16, %s99_s18, [#allocation12]  }
  0x16   :  { %684 = dma.done.wait [#allocation4], 64  }
  0x17   :  { %685 = vsyncadd [#allocation4], 4294967232 }
  0x18   :  { %686 = dma.done.wait [#allocation6], 32  }
  0x19   :  { %687 = vsyncadd [#allocation6], 4294967264 }
  0x1a   :  { %688 = dma.done.wait [#allocation9], 528  }
  0x1b   :  { %689 = vsyncadd [#allocation9], 4294966768 }
  0x1c   :  { %690 = dma.done.wait [#allocation12], 16  }
  0x1d   :  { %691 = vsyncadd [#allocation12], 4294967280  ;;  %v700_v1 = vmov 1   ;;  %v701_v2 = vmov 0   ;;  %v702_v3 = vmov 2   ;;  %v153_v4 = vld [vmem:[%s888_s0] sm:$0xff] }
  0x1e   :  { %509 = vset.pattern.permute.xlu1 %v700_v1  ;;  %508 = vset.pattern.permute.xlu0 %v701_v2  ;;  %v154_v5 = vld [vmem:[%s888_s0 + $0x8] sm:$0xff]  ;;  %v703_v6 = vmov 3   ;;  %v135_v7 = vld [vmem:[%s891_s3 + $0x10] sm:$0xff]  ;;  %v136_v8 = vld [vmem:[%s891_s3 + $0x18] sm:$0xff]  ;;  %vm216_vm0 = vcmask 261120  }
  0x1f   :  { %510 = vset.pattern.permute.xlu2 %v702_v3  ;;  %169 = vperm.xlu1 %509, %v153_v4   ;;  %v138_v9 = vpack.c.bf16 %v136_v8, %v135_v7  ;;  %v133_v10 = vld [vmem:[%s891_s3] sm:$0xff]  ;;  %v134_v11 = vld [vmem:[%s891_s3 + $0x8] sm:$0xff]  ;;  %v140_v48 = vld [vmem:[#allocation8 + $0x8] sm:$0xff]  ;;  %v704_v3 = vmov 32.0  }
  0x20   :  { %157 = vperm.xlu0 %508, %v153_v4   ;;  %182 = vperm.xlu2 %510, %v153_v4   ;;  %v137_v12 = vpack.c.bf16 %v134_v11, %v133_v10  ;;  %v131_v16 = vld [vmem:[#allocation3] sm:$0xf]  ;;  %v513_v36 = vld [vmem:[#allocation5] ss:$0 sm:$0xff]  ;;  %v141_v44 = vld [vmem:[#allocation8 + $0x10] sm:$0xff]  ;;  %522 = vrcp.f32 %v704_v3 }
  0x21   :  { %226 = vmatpush.bf16.msra.mxu0 %v138_v9  ;;  %386 = vmatpush.bf16.msra.mxu2 %v138_v9  ;;  %v176_v17 = vperm.slane %v131_v16, 1  ;;  %v165_v18 = vperm.slane %v131_v16, 0  ;;  %v189_v21 = vperm.slane %v131_v16, 2  ;;  %v202_v30 = vperm.slane %v131_v16, 3  ;;  %v142_v45 = vld [vmem:[#allocation8 + $0x18] sm:$0xff]  ;;  %v139_v47 = vld [vmem:[#allocation8] sm:$0xff] }
  0x22   :  { %v144_v46 = vpack.c.bf16 %v142_v45, %v141_v44  ;;  %v143_v49 = vpack.c.bf16 %v140_v48, %v139_v47  ;;  %v815_v51 = vld [vmem:[#allocation7] ss:$0 sm:$0xff]  ;;  %v820_v58 = vld [vmem:[#allocation10] ss:$0 sm:$0xff] }
  0x24   :  { %249 = vmatpush.bf16.msra.mxu1 %v144_v46  ;;  %406 = vmatpush.bf16.msra.mxu3 %v144_v46 }
  0x25   :  { %227 = vmatpush.bf16.msra.mxu0 %v137_v12  ;;  %387 = vmatpush.bf16.msra.mxu2 %v137_v12 }
  0x27   :  { %173 = vperm.xlu1 %509, %v154_v5  }
  0x28   :  { %162 = vperm.xlu0 %508, %v154_v5   ;;  %186 = vperm.xlu2 %510, %v154_v5  }
  0x29   :  { %250 = vmatpush.bf16.msra.mxu1 %v143_v49  ;;  %407 = vmatpush.bf16.msra.mxu3 %v143_v49 }
  0x2f   :  { %512 = vset.pattern.permute.xlu1 %v703_v6 }
  0x30   :  { %511 = vset.pattern.permute.xlu0 %v703_v6  ;;  %199 = vperm.xlu1 %512, %v154_v5  }
  0x31   :  { %195 = vperm.xlu0 %511, %v153_v4   ;;  %v523_v4 = vpop.eup %522 }
  0x32   :  { %v266_v5 = vmul.f32 32.0, %v523_v4  ;;  %vm270_vm1 = vweird.f32 %v523_v4 }
  0x34   :  { %v267_v6 = vsub.f32 1.0, %v266_v5 }
  0x36   :  { %v268_v7 = vmul.f32 %v523_v4, %v267_v6 }
  0x38   :  { %v269_v8 = vadd.f32 %v523_v4, %v268_v7 }
  0x3a   :  { %v826_v9 = vsel %vm270_vm1, %v523_v4, %v269_v8 }
  0x7a   :  { %v183_v15 = vpop.permute.xlu2 %182 }
  0x7b   :  { %v190_v27 = vmul.f32 %v189_v21, %v183_v15 }
  0x82   :  { %v187_v26 = vpop.permute.xlu2 %186 }
  0x83   :  { %v191_v31 = vmul.f32 %v189_v21, %v187_v26 }
  0x91   :  { %v170_v13 = vpop.permute.xlu1 %169 }
  0x92   :  { %v158_v14 = vpop.permute.xlu0 %157  ;;  %v177_v22 = vmul.f32 %v176_v17, %v170_v13 }
  0x93   :  { %v166_v23 = vmul.f32 %v165_v18, %v158_v14 }
  0x95   :  { %v179_v28 = vadd.f32 %v177_v22, %v166_v23 }
  0x97   :  { %v192_v37 = vadd.f32 %v190_v27, %v179_v28 }
  0x99   :  { %v174_v19 = vpop.permute.xlu1 %173 }
  0x9a   :  { %v163_v20 = vpop.permute.xlu0 %162  ;;  %v178_v24 = vmul.f32 %v176_v17, %v174_v19 }
  0x9b   :  { %v167_v25 = vmul.f32 %v165_v18, %v163_v20 }
  0x9d   :  { %v180_v29 = vadd.f32 %v178_v24, %v167_v25 }
  0x9f   :  { %v193_v34 = vadd.f32 %v191_v31, %v180_v29 }
  0xa2   :  { %v200_v32 = vpop.permute.xlu1 %199 }
  0xa3   :  { %v196_v33 = vpop.permute.xlu0 %195  ;;  %v204_v35 = vmul.f32 %v202_v30, %v200_v32 }
  0xa4   :  { %v203_v38 = vmul.f32 %v202_v30, %v196_v33 }
  0xa5   :  { %v206_v39 = vadd.f32 %v204_v35, %v193_v34  ;;  %v837_v34 = vld [vmem:[%s895_s7] ss:$0 sm:$0xff] }
  0xa6   :  { %v205_v40 = vadd.f32 %v203_v38, %v192_v37  ;;  %v842_v38 = vld [vmem:[%s896_s8] ss:$0 sm:$0xff] }
  0xa7   :  { %v211_v41 = vadd.f32 %v513_v36, %v206_v39 }
  0xa8   :  { %v210_v42 = vadd.f32 %v513_v36, %v205_v40 }
  0xaa   :  { %v212_v43 = vpack.c.bf16 %v211_v41, %v210_v42 }
  0xac   :  { %491 = vmatmul.msk.bf16.vlgmr.msra.gmra.mxu0 %vm216_vm0, %v212_v43 }
 0x129   :  { %v229_v50 = vpop.f32.mrf.mxu0 }
 0x12a   :  { %v230_v52 = vadd.f32 %v815_v51, %v229_v50 }
 0x12c   :  { %v234_v55 = vmax.f32 %v230_v52, 0.0 }
 0x131   :  { %v231_v53 = vpop.f32.mrf.mxu0 }
 0x132   :  { %v232_v54 = vadd.f32 %v815_v51, %v231_v53 }
 0x134   :  { %v235_v56 = vmax.f32 %v232_v54, 0.0 }
 0x136   :  { %v236_v57 = vpack.c.bf16 %v235_v56, %v234_v55 }
 0x138   :  { %492 = vmatmul.msk.bf16.vlgmr.msra.gmra.mxu1 %vm216_vm0, %v236_v57 }
 0x1b5   :  { %v252_v59 = vpop.f32.mrf.mxu1 }
 0x1b6   :  { %v253_v60 = vadd.f32 %v820_v58, %v252_v59 }
 0x1b8   :  { %v257_v61 = vmax.f32 %v253_v60, 0.0 }
 0x1ba   :  { %v259_v62 = vsel %vm216_vm0, %v257_v61, 0.0 }
 0x1bb   :  { %260 = vadd.xlane.f32.xlu2 %v259_v62 }
 0x1bd   :  { %v254_v63 = vpop.f32.mrf.mxu1 }
 0x1be   :  { %v255_v0 = vadd.f32 %v820_v58, %v254_v63 }
 0x1c0   :  { %v258_v1 = vmax.f32 %v255_v0, 0.0 }
 0x1c2   :  { %v262_v2 = vsel %vm216_vm0, %v258_v1, 0.0 }
 0x1c3   :  { %263 = vadd.xlane.f32.xlu1 %v262_v2 }
 0x22e   :  { %v261_v10 = vpop.xlane.xlu2 %260 }
 0x22f   :  { %v272_v11 = vmul.f32 %v826_v9, %v261_v10 }
 0x231   :  { %v274_v12 = vsub.f32 %v257_v61, %v272_v11 }
 0x233   :  { %v276_v13 = vmul.f32 %v274_v12, %v274_v12 }
 0x235   :  { %v278_v14 = vsel %vm216_vm0, %v276_v13, 0.0 }
 0x236   :  { %v264_v15 = vpop.xlane.xlu1 %263  ;;  %279 = vadd.xlane.f32.xlu0 %v278_v14 }
 0x237   :  { %v273_v16 = vmul.f32 %v826_v9, %v264_v15  ;;  %v518_v15 = vld [vmem:[%s897_s9] ss:$0 sm:$0xff] }
 0x239   :  { %v275_v17 = vsub.f32 %v258_v1, %v273_v16 }
 0x23b   :  { %v277_v18 = vmul.f32 %v275_v17, %v275_v17 }
 0x23d   :  { %v281_v19 = vsel %vm216_vm0, %v277_v18, 0.0 }
 0x23e   :  { %282 = vadd.xlane.f32.xlu2 %v281_v19 }
 0x2a9   :  { %v280_v20 = vpop.xlane.xlu0 %279 }
 0x2aa   :  { %v284_v21 = vmul.f32 %v280_v20, %v826_v9 }
 0x2ac   :  { %v286_v22 = vadd.f32 1e-05, %v284_v21  ;;  %v519_v21 = vld [vmem:[#allocation11] ss:$0 sm:$0xff] }
 0x2ae   :  { %524 = vrsqrt.f32 %v286_v22  ;;  %vm294_vm3 = vweird.f32 %v286_v22 }
 0x2b1   :  { %v283_v23 = vpop.xlane.xlu2 %282 }
 0x2b2   :  { %v285_v24 = vmul.f32 %v283_v23, %v826_v9 }
 0x2b4   :  { %v525_v25 = vpop.eup %524  ;;  %v287_v26 = vadd.f32 1e-05, %v285_v24 }
 0x2b5   :  { %v289_v27 = vmul.f32 %v525_v25, %v286_v22  ;;  %vm295_vm2 = vweird.f32 %v525_v25 }
 0x2b6   :  { %526 = vrsqrt.f32 %v287_v26  ;;  %vm296_vm4 = vmor %vm294_vm3, %vm295_vm2  ;;  %vm304_vm6 = vweird.f32 %v287_v26 }
 0x2b7   :  { %v290_v28 = vmul.f32 %v525_v25, %v289_v27 }
 0x2b9   :  { %v291_v29 = vmul.f32 0.5, %v290_v28 }
 0x2bb   :  { %v292_v30 = vsub.f32 1.5, %v291_v29 }
 0x2bc   :  { %v527_v31 = vpop.eup %526 }
 0x2bd   :  { %v293_v32 = vmul.f32 %v525_v25, %v292_v30  ;;  %v299_v33 = vmul.f32 %v527_v31, %v287_v26  ;;  %vm305_vm5 = vweird.f32 %v527_v31 }
 0x2be   :  { %vm306_vm7 = vmor %vm304_vm6, %vm305_vm5  ;;  %vm480_vm5 = vcmask 7168  }
 0x2bf   :  { %v300_v35 = vmul.f32 %v527_v31, %v299_v33  ;;  %v297_v36 = vsel %vm296_vm4, %v525_v25, %v293_v32 }
 0x2c0   :  { %v308_v37 = vmul.f32 %v297_v36, %v274_v12 }
 0x2c1   :  { %v301_v39 = vmul.f32 0.5, %v300_v35 }
 0x2c2   :  { %v313_v40 = vmul.f32 %v837_v34, %v308_v37 }
 0x2c3   :  { %v302_v41 = vsub.f32 1.5, %v301_v39 }
 0x2c4   :  { %v318_v42 = vadd.f32 %v842_v38, %v313_v40 }
 0x2c5   :  { %v303_v43 = vmul.f32 %v527_v31, %v302_v41 }
 0x2c6   :  { %v320_v44 = vsel %vm216_vm0, %v318_v42, 0.0 }
 0x2c7   :  { %321 = vadd.xlane.f32.xlu2 %v320_v44  ;;  %v307_v45 = vsel %vm306_vm7, %v527_v31, %v303_v43 }
 0x2c8   :  { %v309_v46 = vmul.f32 %v307_v45, %v275_v17 }
 0x2ca   :  { %v314_v47 = vmul.f32 %v837_v34, %v309_v46 }
 0x2cc   :  { %v319_v48 = vadd.f32 %v842_v38, %v314_v47 }
 0x2ce   :  { %v323_v49 = vsel %vm216_vm0, %v319_v48, 0.0 }
 0x2cf   :  { %324 = vadd.xlane.f32.xlu1 %v323_v49 }
 0x33a   :  { %v322_v50 = vpop.xlane.xlu2 %321 }
 0x33b   :  { %v326_v52 = vmul.f32 %v322_v50, %v826_v9 }
 0x33d   :  { %v328_v53 = vsub.f32 %v318_v42, %v326_v52 }
 0x33f   :  { %v330_v54 = vmul.f32 %v328_v53, %v328_v53 }
 0x341   :  { %v332_v55 = vsel %vm216_vm0, %v330_v54, 0.0 }
 0x342   :  { %v325_v56 = vpop.xlane.xlu1 %324  ;;  %333 = vadd.xlane.f32.xlu2 %v332_v55 }
 0x343   :  { %v327_v57 = vmul.f32 %v325_v56, %v826_v9 }
 0x345   :  { %v329_v59 = vsub.f32 %v319_v48, %v327_v57 }
 0x347   :  { %v331_v60 = vmul.f32 %v329_v59, %v329_v59 }
 0x349   :  { %v335_v61 = vsel %vm216_vm0, %v331_v60, 0.0 }
 0x34a   :  { %336 = vadd.xlane.f32.xlu0 %v335_v61 }
 0x3b5   :  { %v334_v62 = vpop.xlane.xlu2 %333 }
 0x3b6   :  { %v338_v63 = vmul.f32 %v334_v62, %v826_v9 }
 0x3b8   :  { %v340_v0 = vadd.f32 1e-05, %v338_v63 }
 0x3ba   :  { %528 = vrsqrt.f32 %v340_v0  ;;  %vm348_vm9 = vweird.f32 %v340_v0 }
 0x3bd   :  { %v337_v1 = vpop.xlane.xlu0 %336 }
 0x3be   :  { %v339_v2 = vmul.f32 %v337_v1, %v826_v9 }
 0x3c0   :  { %v529_v3 = vpop.eup %528  ;;  %v341_v4 = vadd.f32 1e-05, %v339_v2 }
 0x3c1   :  { %v343_v5 = vmul.f32 %v529_v3, %v340_v0  ;;  %vm349_vm8 = vweird.f32 %v529_v3 }
 0x3c2   :  { %530 = vrsqrt.f32 %v341_v4  ;;  %vm350_vm10 = vmor %vm348_vm9, %vm349_vm8  ;;  %vm358_vm12 = vweird.f32 %v341_v4 }
 0x3c3   :  { %v344_v6 = vmul.f32 %v529_v3, %v343_v5 }
 0x3c5   :  { %v345_v7 = vmul.f32 0.5, %v344_v6 }
 0x3c7   :  { %v346_v8 = vsub.f32 1.5, %v345_v7 }
 0x3c8   :  { %v531_v10 = vpop.eup %530 }
 0x3c9   :  { %v347_v11 = vmul.f32 %v529_v3, %v346_v8  ;;  %v353_v12 = vmul.f32 %v531_v10, %v341_v4  ;;  %vm359_vm11 = vweird.f32 %v531_v10 }
 0x3ca   :  { %vm360_vm13 = vmor %vm358_vm12, %vm359_vm11 }
 0x3cb   :  { %v351_v13 = vsel %vm350_vm10, %v529_v3, %v347_v11  ;;  %v354_v14 = vmul.f32 %v531_v10, %v353_v12 }
 0x3cc   :  { %v362_v16 = vmul.f32 %v351_v13, %v328_v53 }
 0x3cd   :  { %v355_v17 = vmul.f32 0.5, %v354_v14 }
 0x3ce   :  { %v367_v19 = vmul.f32 %v518_v15, %v362_v16 }
 0x3cf   :  { %v356_v18 = vsub.f32 1.5, %v355_v17 }
 0x3d0   :  { %v372_v24 = vadd.f32 %v519_v21, %v367_v19 }
 0x3d1   :  { %v357_v20 = vmul.f32 %v531_v10, %v356_v18 }
 0x3d2   :  { %532 = vtanh.f32 %v372_v24  ;;  %v521_v24 = vld [vmem:[#allocation2] ss:$0 sm:$0xff] }
 0x3d3   :  { %v361_v22 = vsel %vm360_vm13, %v531_v10, %v357_v20 }
 0x3d4   :  { %v363_v23 = vmul.f32 %v361_v22, %v329_v59 }
 0x3d6   :  { %v368_v25 = vmul.f32 %v518_v15, %v363_v23 }
 0x3d8   :  { %v373_v26 = vadd.f32 %v519_v21, %v368_v25  ;;  %v533_v27 = vpop.eup %532 }
 0x3da   :  { %534 = vtanh.f32 %v373_v26 }
 0x3e0   :  { %v535_v28 = vpop.eup %534 }
 0x3e1   :  { %v376_v29 = vpack.c.bf16 %v535_v28, %v533_v27 }
 0x3e3   :  { %493 = vmatmul.msk.bf16.vlgmr.msra.gmra.mxu2 %vm216_vm0, %v376_v29 }
 0x466   :  { %v389_v30 = vpop.f32.mrf.mxu2 }
 0x467   :  { %v390_v31 = vadd.f32 %v815_v51, %v389_v30 }
 0x469   :  { %v394_v35 = vmax.f32 %v390_v31, 0.0 }
 0x46e   :  { %v391_v32 = vpop.f32.mrf.mxu2 }
 0x46f   :  { %v392_v33 = vadd.f32 %v815_v51, %v391_v32 }
 0x471   :  { %v395_v36 = vmax.f32 %v392_v33, 0.0 }
 0x473   :  { %v396_v37 = vpack.c.bf16 %v395_v36, %v394_v35 }
 0x475   :  { %494 = vmatmul.msk.bf16.vlgmr.msra.gmra.mxu3 %vm216_vm0, %v396_v37 }
 0x4f8   :  { %v409_v39 = vpop.f32.mrf.mxu3 }
 0x4f9   :  { %v410_v40 = vadd.f32 %v820_v58, %v409_v39 }
 0x4fb   :  { %v414_v41 = vmax.f32 %v410_v40, 0.0 }
 0x4fd   :  { %v416_v42 = vsel %vm216_vm0, %v414_v41, 0.0 }
 0x4fe   :  { %417 = vadd.xlane.f32.xlu1 %v416_v42 }
 0x500   :  { %v411_v43 = vpop.f32.mrf.mxu3 }
 0x501   :  { %v412_v44 = vadd.f32 %v820_v58, %v411_v43 }
 0x503   :  { %v415_v45 = vmax.f32 %v412_v44, 0.0 }
 0x505   :  { %v419_v46 = vsel %vm216_vm0, %v415_v45, 0.0 }
 0x506   :  { %420 = vadd.xlane.f32.xlu2 %v419_v46 }
 0x571   :  { %v418_v51 = vpop.xlane.xlu1 %417 }
 0x572   :  { %v422_v47 = vmul.f32 %v418_v51, %v826_v9 }
 0x574   :  { %v424_v48 = vsub.f32 %v414_v41, %v422_v47 }
 0x576   :  { %v426_v49 = vmul.f32 %v424_v48, %v424_v48 }
 0x578   :  { %v428_v50 = vsel %vm216_vm0, %v426_v49, 0.0 }
 0x579   :  { %v421_v52 = vpop.xlane.xlu2 %420  ;;  %429 = vadd.xlane.f32.xlu0 %v428_v50 }
 0x57a   :  { %v423_v53 = vmul.f32 %v421_v52, %v826_v9 }
 0x57c   :  { %v425_v54 = vsub.f32 %v415_v45, %v423_v53 }
 0x57e   :  { %v427_v55 = vmul.f32 %v425_v54, %v425_v54 }
 0x580   :  { %v431_v56 = vsel %vm216_vm0, %v427_v55, 0.0 }
 0x581   :  { %432 = vadd.xlane.f32.xlu1 %v431_v56 }
 0x5ec   :  { %v430_v58 = vpop.xlane.xlu0 %429 }
 0x5ed   :  { %v434_v57 = vmul.f32 %v430_v58, %v826_v9 }
 0x5ef   :  { %v436_v59 = vadd.f32 1e-05, %v434_v57 }
 0x5f1   :  { %536 = vrsqrt.f32 %v436_v59  ;;  %vm444_vm15 = vweird.f32 %v436_v59 }
 0x5f4   :  { %v433_v60 = vpop.xlane.xlu1 %432 }
 0x5f5   :  { %v435_v61 = vmul.f32 %v433_v60, %v826_v9  ;;  %v520_v9 = vld [vmem:[%s899_s11] ss:$0 sm:$0xff] }
 0x5f7   :  { %v537_v62 = vpop.eup %536  ;;  %v437_v63 = vadd.f32 1e-05, %v435_v61 }
 0x5f8   :  { %v439_v0 = vmul.f32 %v537_v62, %v436_v59  ;;  %vm445_vm14 = vweird.f32 %v537_v62 }
 0x5f9   :  { %538 = vrsqrt.f32 %v437_v63  ;;  %vm446_vm1 = vmor %vm444_vm15, %vm445_vm14  ;;  %vm454_vm3 = vweird.f32 %v437_v63 }
 0x5fa   :  { %v440_v1 = vmul.f32 %v537_v62, %v439_v0 }
 0x5fc   :  { %v441_v2 = vmul.f32 0.5, %v440_v1 }
 0x5fe   :  { %v442_v3 = vsub.f32 1.5, %v441_v2 }
 0x5ff   :  { %v539_v4 = vpop.eup %538 }
 0x600   :  { %v443_v5 = vmul.f32 %v537_v62, %v442_v3  ;;  %v449_v6 = vmul.f32 %v539_v4, %v437_v63  ;;  %vm455_vm2 = vweird.f32 %v539_v4 }
 0x601   :  { %vm456_vm4 = vmor %vm454_vm3, %vm455_vm2 }
 0x602   :  { %v447_v7 = vsel %vm446_vm1, %v537_v62, %v443_v5  ;;  %v450_v8 = vmul.f32 %v539_v4, %v449_v6 }
 0x603   :  { %v458_v10 = vmul.f32 %v447_v7, %v424_v48 }
 0x604   :  { %v451_v11 = vmul.f32 0.5, %v450_v8 }
 0x605   :  { %v460_v12 = vmul.f32 %v837_v34, %v458_v10 }
 0x606   :  { %v452_v13 = vsub.f32 1.5, %v451_v11 }
 0x607   :  { %v462_v14 = vadd.f32 %v842_v38, %v460_v12 }
 0x608   :  { %v453_v15 = vmul.f32 %v539_v4, %v452_v13 }
 0x609   :  { %v467_v16 = vmul.f32 %v520_v9, %v462_v14 }
 0x60a   :  { %v457_v17 = vsel %vm456_vm4, %v539_v4, %v453_v15 }
 0x60b   :  { %v469_v18 = vsel %vm216_vm0, %v467_v16, 0.0  ;;  %v459_v19 = vmul.f32 %v457_v17, %v425_v54 }
 0x60c   :  { %470 = vadd.xlane.f32.xlu2 %v469_v18 }
 0x60d   :  { %v461_v20 = vmul.f32 %v837_v34, %v459_v19 }
 0x60f   :  { %v463_v21 = vadd.f32 %v842_v38, %v461_v20 }
 0x611   :  { %v468_v22 = vmul.f32 %v520_v9, %v463_v21 }
 0x613   :  { %v472_v23 = vsel %vm216_vm0, %v468_v22, 0.0 }
 0x614   :  { %473 = vadd.xlane.f32.xlu0 %v472_v23 }
 0x67f   :  { %v471_v25 = vpop.xlane.xlu2 %470 }
 0x680   :  { %v478_v26 = vadd.f32 %v521_v24, %v471_v25 }
 0x682   :  { %481 = vst.msk [vmem:[%s901_s13] sm:$0xff] %vm480_vm5, %v478_v26 }
 0x687   :  { %v474_v27 = vpop.xlane.xlu0 %473 }
 0x688   :  { %v479_v28 = vadd.f32 %v521_v24, %v474_v27 }
 0x68a   :  { %482 = vst.msk [vmem:[%s901_s13 + $0x8] sm:$0xff] %vm480_vm5, %v479_v28 }
 0x68b   :  { %487 = vsyncpa [#allocation4], 1 }
 0x68c   :  { %488 = vsyncpa [#allocation6], 1 }
 0x68d   :  { %489 = vsyncpa [#allocation9], 1 }
 0x68e   :  { %490 = vsyncpa [#allocation12], 1 }

</bundles_post_ra>
